<compile_context>
chip_gen: v7x
topology: tpu7x:2x2x1
jax: 0.10.0
libtpu: 0.0.40
codegen_flags: <defaults>
</compile_context>

<pallas_src>
import functools

import jax
import jax.numpy as jnp
from jax.experimental import pallas as pl
from jax.experimental.pallas import tpu as pltpu

EPS = 1e-5


# ----------------------------------------------------------------------------
# Wrapper-side operator construction (runs once, plain XLA)
# ----------------------------------------------------------------------------
def _build_band_weights(w_oihw, W):
    """(O, I, 3, 3) conv weight -> (3, W*I, W*O) banded row operators.

    B[ky] maps one full image row in merged (W*I) lane layout to that row's
    contribution to the conv output in (W*O) layout.  Horizontal taps and the
    W-direction zero padding are baked in.
    """
    wt = jnp.transpose(w_oihw, (2, 3, 1, 0)).astype(jnp.float32)  # (ky, kx, I, O)
    W_in = w_oihw.shape[1]
    W_out = w_oihw.shape[0]
    bands = []
    for ky in range(3):
        B = jnp.zeros((W * W_in, W * W_out), jnp.float32)
        for kx in range(3):
            dx = kx - 1
            # D[j_src, j_dst] = 1  iff  j_src == j_dst + dx  (zero padding at edges)
            D = jnp.eye(W, k=-dx, dtype=jnp.float32)
            B = B + jnp.kron(D, wt[ky, kx])
        bands.append(B)
    return jnp.stack(bands)  # (3, W*I, W*O)


# ----------------------------------------------------------------------------
# Kernel
# ----------------------------------------------------------------------------
def unet_conv_block_kernel(x_ref, b1_ref, b2_ref, p_ref,
                           g1_ref, be1_ref, g2_ref, be2_ref, out_ref, *, img_h):
    X = x_ref[...].astype(jnp.float32)           # (N*H, W*Cin), lane-dense

    def conv3x3(Y, b_ref):
        # Vertical taps via sublane rolls (XLU) + batch-boundary masking (VPU);
        # horizontal taps + W-direction zero padding are baked into the banded B[ky].
        nh = Y.shape[0]
        row = jax.lax.broadcasted_iota(jnp.int32, Y.shape, 0) % img_h
        Ym = jnp.where(row > 0, pltpu.roll(Y, shift=1, axis=0), 0.0)            # row i-1
        Yp = jnp.where(row < img_h - 1, pltpu.roll(Y, shift=nh - 1, axis=0), 0.0)  # row i+1
        acc = jnp.dot(Ym.astype(jnp.bfloat16), b_ref[0],
                      preferred_element_type=jnp.float32)
        acc = acc + jnp.dot(Y.astype(jnp.bfloat16), b_ref[1],
                            preferred_element_type=jnp.float32)
        acc = acc + jnp.dot(Yp.astype(jnp.bfloat16), b_ref[2],
                            preferred_element_type=jnp.float32)
        return acc                               # (N*H, W*Cout) f32

    def bn_relu(acc, g_ref, be_ref):
        # One-pass batch stats in f32: cross-sublane reduce to a (1, W*C) row, then a
        # tiny P-fold matmul sums over the W lane-groups and broadcasts the per-channel
        # result back across the lanes (1/M folded into P).
        rs1 = jnp.sum(acc, axis=0, keepdims=True)            # (1, W*C)
        rs2 = jnp.sum(acc * acc, axis=0, keepdims=True)      # (1, W*C)
        mean = jnp.dot(rs1, p_ref[...], preferred_element_type=jnp.float32)
        msq = jnp.dot(rs2, p_ref[...], preferred_element_type=jnp.float32)
        var = msq - mean * mean
        # Folded BN affine: one FMA + one max per element on the (NH, W*C) slab.
        scale = g_ref[...] * jax.lax.rsqrt(var + EPS)         # (1, W*C)
        shift = be_ref[...] - mean * scale                    # (1, W*C)
        return jnp.maximum(acc * scale + shift, 0.0)

    y1 = bn_relu(conv3x3(X, b1_ref), g1_ref, be1_ref)
    y2 = bn_relu(conv3x3(y1, b2_ref), g2_ref, be2_ref)
    out_ref[...] = y2.astype(out_ref.dtype)      # full-width (128-lane) stores


# ----------------------------------------------------------------------------
# Wrapper
# ----------------------------------------------------------------------------
def unet_conv_block(x_nchw, params):
    """x_nchw: (N, C_in, H, W) float32; params = (w1,b1,g1,be1,w2,b2,g2,be2)."""
    w1, _b1, g1, be1, w2, _b2, g2, be2 = params   # conv biases cancel under training-mode BN
    N, Cin, H, W = x_nchw.shape
    Cout = w1.shape[0]
    NH = N * H
    M = N * H * W
    WCi, WCo = W * Cin, W * Cout

    # Lane-merged layout: rows = n*H + i, lanes = j*C + c.  Activations/operators that
    # feed the MXU go in as bf16; stats / normalization stay f32 inside the kernel.
    x2d = (jnp.transpose(x_nchw, (0, 2, 3, 1))
           .reshape(NH, WCi).astype(jnp.bfloat16))

    B1 = _build_band_weights(w1, W).astype(jnp.bfloat16)      # (3, W*Cin,  W*Cout)
    B2 = _build_band_weights(w2, W).astype(jnp.bfloat16)      # (3, W*Cout, W*Cout)
    # Lane group-fold + broadcast operator, with 1/M folded in (kept in f32).
    P = jnp.kron(jnp.ones((W, W), jnp.float32),
                 jnp.eye(Cout, dtype=jnp.float32)) * (1.0 / M)  # (W*Cout, W*Cout)

    g1b = jnp.tile(g1.astype(jnp.float32), W).reshape(1, WCo)
    be1b = jnp.tile(be1.astype(jnp.float32), W).reshape(1, WCo)
    g2b = jnp.tile(g2.astype(jnp.float32), W).reshape(1, WCo)
    be2b = jnp.tile(be2.astype(jnp.float32), W).reshape(1, WCo)

    inputs = (x2d, B1, B2, P, g1b, be1b, g2b, be2b)

    # Advisory cost estimate so XLA schedules the surrounding transposes sensibly.
    flops = (2 * 3 * NH * (WCi * WCo + WCo * WCo)     # six conv-tap matmuls
             + 2 * 4 * WCo * WCo                      # four P-fold matmuls
             + 12 * NH * WCo)                         # elementwise BN/ReLU work
    bytes_accessed = (sum(int(a.size) * a.dtype.itemsize for a in inputs)
                      + NH * WCo * 4)
    cost = pl.CostEstimate(flops=int(flops), transcendentals=2 * WCo,
                           bytes_accessed=int(bytes_accessed))

    vmem = pl.BlockSpec(memory_space=pltpu.MemorySpace.VMEM)
    out2d = pl.pallas_call(
        functools.partial(unet_conv_block_kernel, img_h=H),
        out_shape=jax.ShapeDtypeStruct((NH, WCo), x_nchw.dtype),
        in_specs=[vmem] * len(inputs),
        out_specs=vmem,
        cost_estimate=cost,
    )(*inputs)

    out = out2d.reshape(N, H, W, Cout)
    return jnp.transpose(out, (0, 3, 1, 2))               # back to NCHW


# ----------------------------------------------------------------------------
# Pure-JAX reference (mirrors the PyTorch forward, training-mode BN, f32)
# ----------------------------------------------------------------------------
def _reference(x_nchw, params):
    w1, b1, g1, be1, w2, b2, g2, be2 = params

    def conv(x, w, b):
        y = jax.lax.conv_general_dilated(
            x, w, window_strides=(1, 1), padding="SAME",
            dimension_numbers=("NCHW", "OIHW", "NCHW"))
        return y + b[None, :, None, None]

    def bn_relu(x, g, be):
        mean = jnp.mean(x, axis=(0, 2, 3), keepdims=True)
        var = jnp.mean((x - mean) ** 2, axis=(0, 2, 3), keepdims=True)
        y = (x - mean) * jax.lax.rsqrt(var + EPS)
        y = y * g[None, :, None, None] + be[None, :, None, None]
        return jnp.maximum(y, 0.0)

    x = bn_relu(conv(x_nchw, w1, b1), g1, be1)
    x = bn_relu(conv(x, w2, b2), g2, be2)
    return x


if __name__ == "__main__":
    N, Cin, Cout, H, W = 2, 4, 8, 16, 16
    key = jax.random.PRNGKey(0)
    ks = jax.random.split(key, 10)

    x = jax.random.normal(ks[0], (N, Cin, H, W), jnp.float32)

    w1 = jax.random.normal(ks[1], (Cout, Cin, 3, 3), jnp.float32) / jnp.sqrt(9.0 * Cin)
    b1 = 0.1 * jax.random.normal(ks[2], (Cout,), jnp.float32)
    g1 = 1.0 + 0.1 * jax.random.normal(ks[3], (Cout,), jnp.float32)
    be1 = 0.1 * jax.random.normal(ks[4], (Cout,), jnp.float32)

    w2 = jax.random.normal(ks[5], (Cout, Cout, 3, 3), jnp.float32) / jnp.sqrt(9.0 * Cout)
    b2 = 0.1 * jax.random.normal(ks[6], (Cout,), jnp.float32)
    g2 = 1.0 + 0.1 * jax.random.normal(ks[7], (Cout,), jnp.float32)
    be2 = 0.1 * jax.random.normal(ks[8], (Cout,), jnp.float32)

    params = (w1, b1, g1, be1, w2, b2, g2, be2)

    out = unet_conv_block(x, params)
    out = jax.block_until_ready(out)

    ref = _reference(x, params)
    assert out.shape == (N, Cout, H, W)
    # Tolerance reflects bf16 MXU operands (inputs/weights/intermediate activations are
    # quantized to bf16; accumulation and BN math are f32).  Structural errors (wrong
    # roll direction / band mapping / BN stats) would be O(1), far above this.
    assert jnp.allclose(out, ref, atol=3e-2, rtol=3e-2), (
        float(jnp.max(jnp.abs(out - ref))))

    print("KERNEL_OK")
</pallas_src>

<mosaic_0001>
module attributes {stable_mosaic.version = 11 : i64} {
  func.func @unet_conv_block_kernel(%arg0: memref<32x64xbf16, #tpu.memory_space<vmem>>, %arg1: memref<3x64x128xbf16, #tpu.memory_space<vmem>>, %arg2: memref<3x128x128xbf16, #tpu.memory_space<vmem>>, %arg3: memref<128x128xf32, #tpu.memory_space<vmem>>, %arg4: memref<1x128xf32, #tpu.memory_space<vmem>>, %arg5: memref<1x128xf32, #tpu.memory_space<vmem>>, %arg6: memref<1x128xf32, #tpu.memory_space<vmem>>, %arg7: memref<1x128xf32, #tpu.memory_space<vmem>>, %arg8: memref<32x128xf32, #tpu.memory_space<vmem>>) attributes {dimension_semantics = [], scalar_prefetch = 0 : i64, scratch_operands = 0 : i64, tpu.core_type = #tpu.core_type<tc>} {
    %c0 = arith.constant 0 : index
    %c0_0 = arith.constant 0 : index
    %0 = vector.load %arg0[%c0, %c0_0] : memref<32x64xbf16, #tpu.memory_space<vmem>>, vector<32x64xbf16>
    %1 = arith.extf %0 : vector<32x64xbf16> to vector<32x64xf32>
    %2 = tpu.iota {dimensions = array<i32: 0>} : vector<32x64xi32>
    %c16_i32 = arith.constant 16 : i32
    %c0_i32 = arith.constant 0 : i32
    %3 = arith.cmpi eq, %c16_i32, %c0_i32 : i32
    %c1_i32 = arith.constant 1 : i32
    %4 = arith.select %3, %c1_i32, %c16_i32 : i32
    %5 = vector.broadcast %4 : i32 to vector<32x64xi32>
    %6 = arith.remsi %2, %5 : vector<32x64xi32>
    %c0_i32_1 = arith.constant 0 : i32
    %7 = vector.broadcast %c0_i32_1 : i32 to vector<32x64xi32>
    %8 = arith.cmpi ne, %6, %7 : vector<32x64xi32>
    %c0_i32_2 = arith.constant 0 : i32
    %9 = vector.broadcast %c0_i32_2 : i32 to vector<32x64xi32>
    %10 = arith.cmpi slt, %6, %9 : vector<32x64xi32>
    %c0_i32_3 = arith.constant 0 : i32
    %11 = arith.cmpi slt, %4, %c0_i32_3 : i32
    %12 = vector.broadcast %11 : i1 to vector<32x64xi1>
    %13 = vector.broadcast %12 : vector<32x64xi1> to vector<32x64xi1>
    %14 = arith.xori %10, %13 : vector<32x64xi1>
    %15 = arith.andi %14, %8 : vector<32x64xi1>
    %16 = vector.broadcast %4 : i32 to vector<32x64xi32>
    %17 = arith.addi %6, %16 : vector<32x64xi32>
    %18 = arith.select %15, %17, %6 : vector<32x64xi1>, vector<32x64xi32>
    %c0_i32_4 = arith.constant 0 : i32
    %19 = vector.broadcast %c0_i32_4 : i32 to vector<32x64xi32>
    %20 = arith.cmpi sgt, %18, %19 : vector<32x64xi32>
    %c1_i32_5 = arith.constant 1 : i32
    %21 = tpu.dynamic_rotate %1 by %c1_i32_5 dim 0 : vector<32x64xf32>, i32 -> vector<32x64xf32>
    %cst = arith.constant 0.000000e+00 : f32
    %22 = vector.broadcast %cst : f32 to vector<32x64xf32>
    %23 = arith.select %20, %21, %22 : vector<32x64xi1>, vector<32x64xf32>
    %c15_i32 = arith.constant 15 : i32
    %24 = vector.broadcast %c15_i32 : i32 to vector<32x64xi32>
    %25 = arith.cmpi slt, %18, %24 : vector<32x64xi32>
    %c31_i32 = arith.constant 31 : i32
    %26 = tpu.dynamic_rotate %1 by %c31_i32 dim 0 : vector<32x64xf32>, i32 -> vector<32x64xf32>
    %cst_6 = arith.constant 0.000000e+00 : f32
    %27 = vector.broadcast %cst_6 : f32 to vector<32x64xf32>
    %28 = arith.select %25, %26, %27 : vector<32x64xi1>, vector<32x64xf32>
    %29 = arith.truncf %23 : vector<32x64xf32> to vector<32x64xbf16>
    %c0_7 = arith.constant 0 : index
    %c0_8 = arith.constant 0 : index
    %c0_9 = arith.constant 0 : index
    %30 = vector.load %arg1[%c0_7, %c0_8, %c0_9] : memref<3x64x128xbf16, #tpu.memory_space<vmem>>, vector<1x64x128xbf16>
    %31 = vector.shape_cast %30 : vector<1x64x128xbf16> to vector<64x128xbf16>
    %cst_10 = arith.constant dense<0.000000e+00> : vector<32x128xf32>
    %32 = tpu.matmul %29, %31, %cst_10 {dimension_numbers = #tpu.dot_dimension_numbers<[1], [0], [0], [1], [0, 0, 1, 1], [], []>} : vector<32x64xbf16>, vector<64x128xbf16>, vector<32x128xf32> -> vector<32x128xf32>
    %33 = arith.truncf %1 : vector<32x64xf32> to vector<32x64xbf16>
    %c1 = arith.constant 1 : index
    %c0_11 = arith.constant 0 : index
    %c0_12 = arith.constant 0 : index
    %34 = vector.load %arg1[%c1, %c0_11, %c0_12] : memref<3x64x128xbf16, #tpu.memory_space<vmem>>, vector<1x64x128xbf16>
    %35 = vector.shape_cast %34 : vector<1x64x128xbf16> to vector<64x128xbf16>
    %cst_13 = arith.constant dense<0.000000e+00> : vector<32x128xf32>
    %36 = tpu.matmul %33, %35, %cst_13 {dimension_numbers = #tpu.dot_dimension_numbers<[1], [0], [0], [1], [0, 0, 1, 1], [], []>} : vector<32x64xbf16>, vector<64x128xbf16>, vector<32x128xf32> -> vector<32x128xf32>
    %37 = arith.addf %32, %36 : vector<32x128xf32>
    %38 = arith.truncf %28 : vector<32x64xf32> to vector<32x64xbf16>
    %c2 = arith.constant 2 : index
    %c0_14 = arith.constant 0 : index
    %c0_15 = arith.constant 0 : index
    %39 = vector.load %arg1[%c2, %c0_14, %c0_15] : memref<3x64x128xbf16, #tpu.memory_space<vmem>>, vector<1x64x128xbf16>
    %40 = vector.shape_cast %39 : vector<1x64x128xbf16> to vector<64x128xbf16>
    %cst_16 = arith.constant dense<0.000000e+00> : vector<32x128xf32>
    %41 = tpu.matmul %38, %40, %cst_16 {dimension_numbers = #tpu.dot_dimension_numbers<[1], [0], [0], [1], [0, 0, 1, 1], [], []>} : vector<32x64xbf16>, vector<64x128xbf16>, vector<32x128xf32> -> vector<32x128xf32>
    %42 = arith.addf %37, %41 : vector<32x128xf32>
    %cst_17 = arith.constant dense<0.000000e+00> : vector<128xf32>
    %43 = vector.multi_reduction <add>, %42, %cst_17 [0] : vector<32x128xf32> to vector<128xf32>
    %44 = vector.shape_cast %43 : vector<128xf32> to vector<1x128xf32>
    %45 = arith.mulf %42, %42 : vector<32x128xf32>
    %cst_18 = arith.constant dense<0.000000e+00> : vector<128xf32>
    %46 = vector.multi_reduction <add>, %45, %cst_18 [0] : vector<32x128xf32> to vector<128xf32>
    %47 = vector.shape_cast %46 : vector<128xf32> to vector<1x128xf32>
    %c0_19 = arith.constant 0 : index
    %c0_20 = arith.constant 0 : index
    %48 = vector.load %arg3[%c0_19, %c0_20] : memref<128x128xf32, #tpu.memory_space<vmem>>, vector<128x128xf32>
    %cst_21 = arith.constant dense<0.000000e+00> : vector<1x128xf32>
    %49 = tpu.matmul %44, %48, %cst_21 {dimension_numbers = #tpu.dot_dimension_numbers<[1], [0], [0], [1], [0, 0, 1, 1], [], []>} : vector<1x128xf32>, vector<128x128xf32>, vector<1x128xf32> -> vector<1x128xf32>
    %c0_22 = arith.constant 0 : index
    %c0_23 = arith.constant 0 : index
    %50 = vector.load %arg3[%c0_22, %c0_23] : memref<128x128xf32, #tpu.memory_space<vmem>>, vector<128x128xf32>
    %cst_24 = arith.constant dense<0.000000e+00> : vector<1x128xf32>
    %51 = tpu.matmul %47, %50, %cst_24 {dimension_numbers = #tpu.dot_dimension_numbers<[1], [0], [0], [1], [0, 0, 1, 1], [], []>} : vector<1x128xf32>, vector<128x128xf32>, vector<1x128xf32> -> vector<1x128xf32>
    %52 = arith.mulf %49, %49 : vector<1x128xf32>
    %53 = arith.subf %51, %52 : vector<1x128xf32>
    %c0_25 = arith.constant 0 : index
    %c0_26 = arith.constant 0 : index
    %54 = vector.load %arg4[%c0_25, %c0_26] : memref<1x128xf32, #tpu.memory_space<vmem>>, vector<1x128xf32>
    %cst_27 = arith.constant 9.99999974E-6 : f32
    %55 = vector.broadcast %cst_27 : f32 to vector<1x128xf32>
    %56 = arith.addf %53, %55 : vector<1x128xf32>
    %57 = math.rsqrt %56 : vector<1x128xf32>
    %58 = arith.mulf %54, %57 : vector<1x128xf32>
    %c0_28 = arith.constant 0 : index
    %c0_29 = arith.constant 0 : index
    %59 = vector.load %arg5[%c0_28, %c0_29] : memref<1x128xf32, #tpu.memory_space<vmem>>, vector<1x128xf32>
    %60 = arith.mulf %49, %58 : vector<1x128xf32>
    %61 = arith.subf %59, %60 : vector<1x128xf32>
    %62 = vector.broadcast %58 : vector<1x128xf32> to vector<32x128xf32>
    %63 = arith.mulf %42, %62 : vector<32x128xf32>
    %64 = vector.broadcast %61 : vector<1x128xf32> to vector<32x128xf32>
    %65 = arith.addf %63, %64 : vector<32x128xf32>
    %cst_30 = arith.constant 0.000000e+00 : f32
    %66 = vector.broadcast %cst_30 : f32 to vector<32x128xf32>
    %67 = arith.maximumf %65, %66 : vector<32x128xf32>
    %68 = tpu.iota {dimensions = array<i32: 0>} : vector<32x128xi32>
    %c16_i32_31 = arith.constant 16 : i32
    %c0_i32_32 = arith.constant 0 : i32
    %69 = arith.cmpi eq, %c16_i32_31, %c0_i32_32 : i32
    %c1_i32_33 = arith.constant 1 : i32
    %70 = arith.select %69, %c1_i32_33, %c16_i32_31 : i32
    %71 = vector.broadcast %70 : i32 to vector<32x128xi32>
    %72 = arith.remsi %68, %71 : vector<32x128xi32>
    %c0_i32_34 = arith.constant 0 : i32
    %73 = vector.broadcast %c0_i32_34 : i32 to vector<32x128xi32>
    %74 = arith.cmpi ne, %72, %73 : vector<32x128xi32>
    %c0_i32_35 = arith.constant 0 : i32
    %75 = vector.broadcast %c0_i32_35 : i32 to vector<32x128xi32>
    %76 = arith.cmpi slt, %72, %75 : vector<32x128xi32>
    %c0_i32_36 = arith.constant 0 : i32
    %77 = arith.cmpi slt, %70, %c0_i32_36 : i32
    %78 = vector.broadcast %77 : i1 to vector<32x128xi1>
    %79 = vector.broadcast %78 : vector<32x128xi1> to vector<32x128xi1>
    %80 = arith.xori %76, %79 : vector<32x128xi1>
    %81 = arith.andi %80, %74 : vector<32x128xi1>
    %82 = vector.broadcast %70 : i32 to vector<32x128xi32>
    %83 = arith.addi %72, %82 : vector<32x128xi32>
    %84 = arith.select %81, %83, %72 : vector<32x128xi1>, vector<32x128xi32>
    %c0_i32_37 = arith.constant 0 : i32
    %85 = vector.broadcast %c0_i32_37 : i32 to vector<32x128xi32>
    %86 = arith.cmpi sgt, %84, %85 : vector<32x128xi32>
    %c1_i32_38 = arith.constant 1 : i32
    %87 = tpu.dynamic_rotate %67 by %c1_i32_38 dim 0 : vector<32x128xf32>, i32 -> vector<32x128xf32>
    %cst_39 = arith.constant 0.000000e+00 : f32
    %88 = vector.broadcast %cst_39 : f32 to vector<32x128xf32>
    %89 = arith.select %86, %87, %88 : vector<32x128xi1>, vector<32x128xf32>
    %c15_i32_40 = arith.constant 15 : i32
    %90 = vector.broadcast %c15_i32_40 : i32 to vector<32x128xi32>
    %91 = arith.cmpi slt, %84, %90 : vector<32x128xi32>
    %c31_i32_41 = arith.constant 31 : i32
    %92 = tpu.dynamic_rotate %67 by %c31_i32_41 dim 0 : vector<32x128xf32>, i32 -> vector<32x128xf32>
    %cst_42 = arith.constant 0.000000e+00 : f32
    %93 = vector.broadcast %cst_42 : f32 to vector<32x128xf32>
    %94 = arith.select %91, %92, %93 : vector<32x128xi1>, vector<32x128xf32>
    %95 = arith.truncf %89 : vector<32x128xf32> to vector<32x128xbf16>
    %c0_43 = arith.constant 0 : index
    %c0_44 = arith.constant 0 : index
    %c0_45 = arith.constant 0 : index
    %96 = vector.load %arg2[%c0_43, %c0_44, %c0_45] : memref<3x128x128xbf16, #tpu.memory_space<vmem>>, vector<1x128x128xbf16>
    %97 = vector.shape_cast %96 : vector<1x128x128xbf16> to vector<128x128xbf16>
    %cst_46 = arith.constant dense<0.000000e+00> : vector<32x128xf32>
    %98 = tpu.matmul %95, %97, %cst_46 {dimension_numbers = #tpu.dot_dimension_numbers<[1], [0], [0], [1], [0, 0, 1, 1], [], []>} : vector<32x128xbf16>, vector<128x128xbf16>, vector<32x128xf32> -> vector<32x128xf32>
    %99 = arith.truncf %67 : vector<32x128xf32> to vector<32x128xbf16>
    %c1_47 = arith.constant 1 : index
    %c0_48 = arith.constant 0 : index
    %c0_49 = arith.constant 0 : index
    %100 = vector.load %arg2[%c1_47, %c0_48, %c0_49] : memref<3x128x128xbf16, #tpu.memory_space<vmem>>, vector<1x128x128xbf16>
    %101 = vector.shape_cast %100 : vector<1x128x128xbf16> to vector<128x128xbf16>
    %cst_50 = arith.constant dense<0.000000e+00> : vector<32x128xf32>
    %102 = tpu.matmul %99, %101, %cst_50 {dimension_numbers = #tpu.dot_dimension_numbers<[1], [0], [0], [1], [0, 0, 1, 1], [], []>} : vector<32x128xbf16>, vector<128x128xbf16>, vector<32x128xf32> -> vector<32x128xf32>
    %103 = arith.addf %98, %102 : vector<32x128xf32>
    %104 = arith.truncf %94 : vector<32x128xf32> to vector<32x128xbf16>
    %c2_51 = arith.constant 2 : index
    %c0_52 = arith.constant 0 : index
    %c0_53 = arith.constant 0 : index
    %105 = vector.load %arg2[%c2_51, %c0_52, %c0_53] : memref<3x128x128xbf16, #tpu.memory_space<vmem>>, vector<1x128x128xbf16>
    %106 = vector.shape_cast %105 : vector<1x128x128xbf16> to vector<128x128xbf16>
    %cst_54 = arith.constant dense<0.000000e+00> : vector<32x128xf32>
    %107 = tpu.matmul %104, %106, %cst_54 {dimension_numbers = #tpu.dot_dimension_numbers<[1], [0], [0], [1], [0, 0, 1, 1], [], []>} : vector<32x128xbf16>, vector<128x128xbf16>, vector<32x128xf32> -> vector<32x128xf32>
    %108 = arith.addf %103, %107 : vector<32x128xf32>
    %cst_55 = arith.constant dense<0.000000e+00> : vector<128xf32>
    %109 = vector.multi_reduction <add>, %108, %cst_55 [0] : vector<32x128xf32> to vector<128xf32>
    %110 = vector.shape_cast %109 : vector<128xf32> to vector<1x128xf32>
    %111 = arith.mulf %108, %108 : vector<32x128xf32>
    %cst_56 = arith.constant dense<0.000000e+00> : vector<128xf32>
    %112 = vector.multi_reduction <add>, %111, %cst_56 [0] : vector<32x128xf32> to vector<128xf32>
    %113 = vector.shape_cast %112 : vector<128xf32> to vector<1x128xf32>
    %c0_57 = arith.constant 0 : index
    %c0_58 = arith.constant 0 : index
    %114 = vector.load %arg3[%c0_57, %c0_58] : memref<128x128xf32, #tpu.memory_space<vmem>>, vector<128x128xf32>
    %cst_59 = arith.constant dense<0.000000e+00> : vector<1x128xf32>
    %115 = tpu.matmul %110, %114, %cst_59 {dimension_numbers = #tpu.dot_dimension_numbers<[1], [0], [0], [1], [0, 0, 1, 1], [], []>} : vector<1x128xf32>, vector<128x128xf32>, vector<1x128xf32> -> vector<1x128xf32>
    %c0_60 = arith.constant 0 : index
    %c0_61 = arith.constant 0 : index
    %116 = vector.load %arg3[%c0_60, %c0_61] : memref<128x128xf32, #tpu.memory_space<vmem>>, vector<128x128xf32>
    %cst_62 = arith.constant dense<0.000000e+00> : vector<1x128xf32>
    %117 = tpu.matmul %113, %116, %cst_62 {dimension_numbers = #tpu.dot_dimension_numbers<[1], [0], [0], [1], [0, 0, 1, 1], [], []>} : vector<1x128xf32>, vector<128x128xf32>, vector<1x128xf32> -> vector<1x128xf32>
    %118 = arith.mulf %115, %115 : vector<1x128xf32>
    %119 = arith.subf %117, %118 : vector<1x128xf32>
    %c0_63 = arith.constant 0 : index
    %c0_64 = arith.constant 0 : index
    %120 = vector.load %arg6[%c0_63, %c0_64] : memref<1x128xf32, #tpu.memory_space<vmem>>, vector<1x128xf32>
    %cst_65 = arith.constant 9.99999974E-6 : f32
    %121 = vector.broadcast %cst_65 : f32 to vector<1x128xf32>
    %122 = arith.addf %119, %121 : vector<1x128xf32>
    %123 = math.rsqrt %122 : vector<1x128xf32>
    %124 = arith.mulf %120, %123 : vector<1x128xf32>
    %c0_66 = arith.constant 0 : index
    %c0_67 = arith.constant 0 : index
    %125 = vector.load %arg7[%c0_66, %c0_67] : memref<1x128xf32, #tpu.memory_space<vmem>>, vector<1x128xf32>
    %126 = arith.mulf %115, %124 : vector<1x128xf32>
    %127 = arith.subf %125, %126 : vector<1x128xf32>
    %128 = vector.broadcast %124 : vector<1x128xf32> to vector<32x128xf32>
    %129 = arith.mulf %108, %128 : vector<32x128xf32>
    %130 = vector.broadcast %127 : vector<1x128xf32> to vector<32x128xf32>
    %131 = arith.addf %129, %130 : vector<32x128xf32>
    %cst_68 = arith.constant 0.000000e+00 : f32
    %132 = vector.broadcast %cst_68 : f32 to vector<32x128xf32>
    %133 = arith.maximumf %131, %132 : vector<32x128xf32>
    %c0_69 = arith.constant 0 : index
    %c0_70 = arith.constant 0 : index
    %134 = vector.load %arg8[%c0_69, %c0_70] : memref<32x128xf32, #tpu.memory_space<vmem>>, vector<32x128xf32>
    tpu.vector_store %arg8[%c0_69, %c0_70], %133 {strides = array<i32>} : memref<32x128xf32, #tpu.memory_space<vmem>>, vector<32x128xf32>,
    return
  }
}

</mosaic_0001>

<bundles_post_ra>
// kernel: tpu_custom_call.1
= control target key start
LH: loop header
LB: loop body
LE: loop exit
PB: predicated region body
PF: predicated region fallthrough
CT: control target
= control target key end

     0   :  { %13 = vsyncpa [#allocation3], 0  ;;  %s2327_s0 = inlined_call_operand.hbm [shape: bf16[32,64], index: 0, kind: input, shape index: {}]   ;;  %s2328_s1 = inlined_call_operand.hbm [shape: bf16[3,64,128], index: 1, kind: input, shape index: {}]   ;;  %s2329_s2 = inlined_call_operand.hbm [shape: bf16[3,128,128], index: 2, kind: input, shape index: {}]   ;;  %s2330_s3 = inlined_call_operand.hbm [shape: f32[128,128], index: 3, kind: input, shape index: {}]   ;;  %s2331_s4 = inlined_call_operand.vmem [shape: f32[1,128], index: 4, kind: input, shape index: {}]   ;;  %s2332_s5 = inlined_call_operand.vmem [shape: f32[1,128], index: 5, kind: input, shape index: {}]   ;;  %s2333_s6 = inlined_call_operand.vmem [shape: f32[1,128], index: 6, kind: input, shape index: {}]   ;;  %s2334_s7 = inlined_call_operand.vmem [shape: f32[1,128], index: 7, kind: input, shape index: {}]   ;;  %s2335_s8 = inlined_call_operand.hbm [shape: f32[32,128], index: 8, kind: output, shape index: {}]  }
   0x1   :  { %14 = vsyncpa [#allocation6], 0 }
   0x2   :  { %15 = vsyncpa [#allocation9], 0 }
   0x3   :  { %16 = vsyncpa [#allocation4], 0  ;;  %s1962_s27 = smov [#allocation5]   ;;  %s1963_s29 = smov [#allocation2]  }
   0x4   :  { %s34_s28 = sshll.u32 %s1962_s27, 4  ;;  %s22_s30 = sshll.u32 %s1963_s29, 4  ;;  %s35_s28 = int_to_ptr.vmem [resolvable:$true] %s34_s28  ;;  %s2020_s30 = int_to_ptr.vmem [resolvable:$true] %s22_s30 }
   0x5   :  { %s1844_s11 = scalar_lea.hbm %s2328_s1, 1536 }
   0x6   :  { %p1845_p0 = scmp.ne.s32.totalorder %s2328_s1, %s1844_s11  ;;  %p1848_p1 = scmp.lt.u32.totalorder %s1844_s11, %s2328_s1 }
   0x8   :  { %p1850_p2 = pnand %p1848_p1, %p1845_p0 }
   0xa   :  { %1853 = shalt.err (!%p1850_p2)
}
   0xb   :  { %s1854_s16 = scalar_lea.vmem %s35_s28, 1536  ;;  %p1859_p4 = scmp.lt.s32.totalorder %s35_s28, %s35_s28 }
   0xc   :  { %p1855_p3 = scmp.ne.s32.totalorder %s35_s28, %s1854_s16  ;;  %p1860_p5 = scmp.lt.s32.totalorder %s1854_s16, %s1854_s16 }
   0xe   :  { %p1861_p6 = por %p1860_p5, %p1859_p4 }
  0x10   :  { %p1862_p7 = pnand %p1861_p6, %p1855_p3 }
  0x12   :  { %1865 = shalt.err (!%p1862_p7)
}
  0x13   :  { %s1964_s17 = smov 64   ;;  %s1965_s18 = smov 4  }
  0x14   :  { %40 = dma.hbm_to_vmem [thread:$0]  %s2328_s1, 1536, %s35_s28, [#allocation6], %s1964_s17, %s1964_s17, %s1965_s18  }
  0x15   :  { %s1866_s23 = scalar_lea.hbm %s2327_s0, 256 }
  0x16   :  { %p1867_p8 = scmp.ne.s32.totalorder %s2327_s0, %s1866_s23  ;;  %p1870_p9 = scmp.lt.u32.totalorder %s1866_s23, %s2327_s0 }
  0x18   :  { %p1872_p10 = pnand %p1870_p9, %p1867_p8 }
  0x1a   :  { %1875 = shalt.err (!%p1872_p10)
}
  0x1b   :  { %s1876_s29 = scalar_lea.vmem %s2020_s30, 256  ;;  %p1881_p12 = scmp.lt.s32.totalorder %s2020_s30, %s2020_s30 }
  0x1c   :  { %p1877_p11 = scmp.ne.s32.totalorder %s2020_s30, %s1876_s29  ;;  %p1882_p13 = scmp.lt.s32.totalorder %s1876_s29, %s1876_s29 }
  0x1e   :  { %p1883_p0 = por %p1882_p13, %p1881_p12 }
  0x20   :  { %p1884_p1 = pnand %p1883_p0, %p1877_p11 }
  0x22   :  { %1887 = shalt.err (!%p1884_p1)
}
  0x23   :  { %28 = dma.hbm_to_vmem [thread:$0]  %s2327_s0, 256, %s2020_s30, [#allocation3], %s1964_s17, %s1964_s17, %s1965_s18  }
  0x24   :  { %s1966_s9 = smov [#allocation7]   ;;  %s1967_s11 = smov [#allocation8]  }
  0x25   :  { %s46_s10 = sshll.u32 %s1966_s9, 4  ;;  %s58_s12 = sshll.u32 %s1967_s11, 4  ;;  %s47_s10 = int_to_ptr.vmem [resolvable:$true] %s46_s10  ;;  %s2057_s12 = int_to_ptr.vmem [resolvable:$true] %s58_s12 }
  0x26   :  { %s1888_s15 = scalar_lea.hbm %s2329_s2, 3072 }
  0x27   :  { %p1889_p2 = scmp.ne.s32.totalorder %s2329_s2, %s1888_s15  ;;  %p1892_p3 = scmp.lt.u32.totalorder %s1888_s15, %s2329_s2 }
  0x29   :  { %p1894_p4 = pnand %p1892_p3, %p1889_p2 }
  0x2b   :  { %1897 = shalt.err (!%p1894_p4)
}
  0x2c   :  { %s1898_s0 = scalar_lea.vmem %s47_s10, 3072  ;;  %p1903_p6 = scmp.lt.s32.totalorder %s47_s10, %s47_s10 }
  0x2d   :  { %p1899_p5 = scmp.ne.s32.totalorder %s47_s10, %s1898_s0  ;;  %p1904_p7 = scmp.lt.s32.totalorder %s1898_s0, %s1898_s0 }
  0x2f   :  { %p1905_p8 = por %p1904_p7, %p1903_p6 }
  0x31   :  { %p1906_p9 = pnand %p1905_p8, %p1899_p5 }
  0x33   :  { %1909 = shalt.err (!%p1906_p9)
}
  0x34   :  { %52 = dma.hbm_to_vmem [thread:$0]  %s2329_s2, 3072, %s47_s10, [#allocation6], %s1964_s17, %s1964_s17, %s1965_s18  }
  0x35   :  { %s1910_s25 = scalar_lea.hbm %s2330_s3, 2048 }
  0x36   :  { %p1911_p10 = scmp.ne.s32.totalorder %s2330_s3, %s1910_s25  ;;  %p1914_p11 = scmp.lt.u32.totalorder %s1910_s25, %s2330_s3 }
  0x38   :  { %p1916_p12 = pnand %p1914_p11, %p1911_p10 }
  0x3a   :  { %1919 = shalt.err (!%p1916_p12)
}
  0x3b   :  { %s1920_s28 = scalar_lea.vmem %s2057_s12, 2048  ;;  %p1925_p0 = scmp.lt.s32.totalorder %s2057_s12, %s2057_s12 }
  0x3c   :  { %p1921_p13 = scmp.ne.s32.totalorder %s2057_s12, %s1920_s28  ;;  %p1926_p1 = scmp.lt.s32.totalorder %s1920_s28, %s1920_s28 }
  0x3e   :  { %p1927_p2 = por %p1926_p1, %p1925_p0 }
  0x40   :  { %p1928_p3 = pnand %p1927_p2, %p1921_p13 }
  0x42   :  { %1931 = shalt.err (!%p1928_p3)
}
  0x43   :  { %s1968_s2 = smov 128   ;;  %s1969_s17 = smov 8  }
  0x44   :  { %64 = dma.hbm_to_vmem [thread:$0]  %s2330_s3, 2048, %s2057_s12, [#allocation9], %s1968_s2, %s1968_s2, %s1969_s17  }
  0x45   :  { %1954 = dma.done.wait [#allocation3], 256  }
  0x46   :  { %1955 = vsyncadd [#allocation3], 4294967040 }
  0x47   :  { %1956 = dma.done.wait [#allocation6], 4608  }
  0x48   :  { %1957 = vsyncadd [#allocation6], 4294962688 }
  0x49   :  { %1958 = dma.done.wait [#allocation9], 2048  }
  0x4a   :  { %1959 = vsyncadd [#allocation9], 4294965248  ;;  %v94_v0 = vlaneseq  ;;  %v1800_v5 = vld [vmem:[#allocation5] sm:$0xff]   ;;  %vm234_vm0 = vcmask 523264   ;;  %v1801_v7 = vld [vmem:[#allocation5 + $0x8] sm:$0xff]   ;;  %v1970_v57 = vmov 0.0|0.0  }
  0x4b   :  { %1451 = vmatprep.subr.bf16.mxu0 %v1800_v5  ;;  %v1802_v9 = vld [vmem:[#allocation5 + $0x10] sm:$0xff]   ;;  %v1804_v11 = vld [vmem:[#allocation5 + $0x20] sm:$0xff]   ;;  %v2102_v14 = vld [vmem:[#allocation2 + $0x8] sm:$0xff]   ;;  %vm1971_vm7 = vmmov 0   ;;  %vm1973_vm8 = vmmov 1   ;;  %s1974_s15 = smov [#allocation10]  }
  0x4c   :  { %v2094_v1 = vshrl.u32 %v94_v0, 7  ;;  %1452 = vmatpush3.bf16.msra.mxu0 %v1800_v5  ;;  %v86_v13 = vld [vmem:[#allocation2] sm:$0xff]   ;;  %v1803_v17 = vld [vmem:[#allocation5 + $0x18] sm:$0xff]   ;;  %1439 = vmatprep.subr.bf16.mxu1 %v1804_v11  ;;  %v93_v20 = vunpack.c.h.bf16 %v2102_v14  ;;  %v92_v21 = vunpack.c.l.bf16 %v2102_v14  ;;  %v1806_v22 = vld [vmem:[#allocation5 + $0x28] sm:$0xff]   ;;  %s1253_s16 = sshll.u32 %s1974_s15, 4  ;;  %s1254_s16 = int_to_ptr.vmem [resolvable:$true] %s1253_s16 }
  0x4d   :  { %1453 = vmatprep.subr.bf16.mxu0 %v1801_v7  ;;  %v90_v18 = vunpack.c.l.bf16 %v86_v13  ;;  %v91_v19 = vunpack.c.h.bf16 %v86_v13  ;;  %1440 = vmatpush3.bf16.msra.mxu1 %v1804_v11  ;;  %v1808_v34 = vld [vmem:[#allocation5 + $0x30] sm:$0xff]   ;;  %v1805_v37 = vld [vmem:[#allocation5 + $0x40] sm:$0xff]   ;;  %v1810_v42 = vld [vmem:[#allocation5 + $0x38] sm:$0xff]   ;;  %p1937_p5 = scmp.lt.s32.totalorder %s1254_s16, %s1254_s16 }
  0x4e   :  { %v97_v2 = vadd.s32 16, %v2094_v1  ;;  %v103_v3 = vand.u32 15, %v2094_v1  ;;  %v96_v4 = vadd.s32 8, %v2094_v1  ;;  %v98_v6 = vadd.s32 24, %v2094_v1  ;;  %1441 = vmatprep.subr.bf16.mxu1 %v1806_v22  ;;  %1447 = vmatprep.mubr.msk.bf16.mxu1 %vm234_vm0, %v86_v13  ;;  %v1807_v48 = vld [vmem:[#allocation5 + $0x48] sm:$0xff]   ;;  %v485_v50 = vld [vmem:[#allocation8] sm:$0xff] }
  0x4f   :  { %vm155_vm1 = vcmp.lt.s32.totalorder %v2094_v1, 1  ;;  %vm172_vm2 = vcmp.lt.s32.totalorder %v2094_v1, 7  ;;  %v151_v24 = vrot.slane %v90_v18, 7  ;;  %v152_v25 = vrot.slane %v91_v19, 7  ;;  %v486_v51 = vld [vmem:[#allocation8 + $0x8] sm:$0xff]  ;;  %v1809_v53 = vld [vmem:[#allocation5 + $0x50] sm:$0xff]  }
  0x50   :  { %v117_v8 = vand.u32 15, %v97_v2  ;;  %v110_v10 = vand.u32 15, %v96_v4  ;;  %v124_v12 = vand.u32 15, %v98_v6  ;;  %vm2104_vm3 = vcmp.gt.s32.totalorder %v103_v3, 0  ;;  %1454 = vmatpush3.bf16.msra.mxu0 %v1801_v7  ;;  %v487_v54 = vld [vmem:[#allocation8 + $0x10] sm:$0xff]  ;;  %v488_v55 = vld [vmem:[#allocation8 + $0x18] sm:$0xff] }
  0x51   :  { %1455 = vmatprep.subr.bf16.mxu0 %v1802_v9  ;;  %v154_v26 = vrot.slane %v93_v20, 7  ;;  %v168_v28 = vrot.slane %v90_v18, 1  ;;  %v169_v29 = vrot.slane %v91_v19, 1  ;;  %v171_v30 = vrot.slane %v93_v20, 1  ;;  %1442 = vmatpush3.bf16.msra.mxu1 %v1806_v22  ;;  %v1812_v58 = vld [vmem:[#allocation5 + $0x58] sm:$0xff]   ;;  %v489_v62 = vld [vmem:[#allocation8 + $0x20] sm:$0xff]  ;;  %vm1303_vm9 = vmpackc.low %vm1973_vm8, %vm2104_vm3 }
  0x52   :  { %vm2108_vm4 = vcmp.gt.s32.totalorder %v117_v8, 0  ;;  %vm2114_vm5 = vcmp.lt.s32.totalorder %v110_v10, 15  ;;  %vm2118_vm6 = vcmp.lt.s32.totalorder %v124_v12, 15  ;;  %v153_v31 = vrot.slane %v92_v21, 7  ;;  %1443 = vmatprep.subr.bf16.mxu1 %v1808_v34  ;;  %v490_v63 = vld [vmem:[#allocation8 + $0x28] sm:$0xff]  ;;  %v491_v2 = vld [vmem:[#allocation8 + $0x30] sm:$0xff] }
  0x53   :  { %v158_v32 = vsel %vm155_vm1, %v151_v24, %v152_v25  ;;  %v159_v33 = vsel %vm155_vm1, %v154_v26, %v151_v24  ;;  %v170_v35 = vrot.slane %v92_v21, 1  ;;  %v175_v44 = vsel %vm172_vm2, %v168_v28, %v169_v29  ;;  %v492_v3 = vld [vmem:[#allocation8 + $0x38] sm:$0xff]  ;;  %v493_v5 = vld [vmem:[#allocation8 + $0x40] sm:$0xff]  ;;  %v494_v6 = vld [vmem:[#allocation8 + $0x48] sm:$0xff] }
  0x54   :  { %1456 = vmatpush3.bf16.msra.mxu0 %v1802_v9  ;;  %v160_v36 = vsel %vm2104_vm3, %v159_v33, 0.0  ;;  %v156_v38 = vsel %vm155_vm1, %v153_v31, %v154_v26  ;;  %v157_v39 = vsel %vm155_vm1, %v152_v25, %v153_v31  ;;  %v176_v46 = vsel %vm172_vm2, %v171_v30, %v168_v28  ;;  %v495_v8 = vld [vmem:[#allocation8 + $0x50] sm:$0xff]  ;;  %v496_v9 = vld [vmem:[#allocation8 + $0x58] sm:$0xff]  ;;  %v497_v11 = vld [vmem:[#allocation8 + $0x60] sm:$0xff] }
  0x55   :  { %1457 = vmatprep.subr.bf16.mxu0 %v1803_v17  ;;  %v181_v40 = vpack.c.bf16 %v158_v32, %v160_v36  ;;  %v162_v41 = vsel %vm2108_vm4, %v157_v39, 0.0  ;;  %v174_v43 = vsel %vm172_vm2, %v169_v29, %v170_v35  ;;  %v180_v49 = vsel %vm2118_vm6, %v176_v46, 0.0  ;;  %1444 = vmatpush3.bf16.msra.mxu1 %v1808_v34  ;;  %v498_v12 = vld [vmem:[#allocation8 + $0x68] sm:$0xff]  ;;  %vm1306_vm10 = vmpackc.low %vm1973_vm8, %vm2108_vm4  ;;  %v1837_v23 = vld [vmem:[#allocation7 + $0xb8] sm:$0xff]  }
  0x56   :  { %v178_v45 = vsel %vm2114_vm5, %v174_v43, 0.0  ;;  %v182_v47 = vpack.c.bf16 %v156_v38, %v162_v41  ;;  %1445 = vmatprep.subr.bf16.mxu1 %v1810_v42  ;;  %v2147_v56 = vpack.c.bf16 %v486_v51, %v485_v50  ;;  %v2154_v59 = vpack.c.bf16 %v488_v55, %v487_v54  ;;  %vm1317_vm11 = vmpackc.low %vm2114_vm5, %vm1973_vm8  ;;  %v1835_v16 = vld [vmem:[#allocation7 + $0xa8] sm:$0xff]  }
  0x57   :  { %1459 = vmatprep.mubr.msk.bf16.mxu0 %vm234_vm0, %v181_v40  ;;  %v369_v52 = vpack.c.bf16 %v178_v45, %v175_v44  ;;  %v173_v60 = vsel %vm172_vm2, %v170_v35, %v171_v30  ;;  %v2162_v0 = vpack.c.bf16 %v490_v63, %v489_v62  ;;  %v2166_v4 = vpack.c.bf16 %v492_v3, %v491_v2  ;;  %v1817_v62 = vld [vmem:[#allocation7 + $0x58] sm:$0xff]   ;;  %v1818_v63 = vld [vmem:[#allocation7 + $0x60] sm:$0xff]   ;;  %v1819_v2 = vld [vmem:[#allocation7 + $0x68] sm:$0xff]  }
  0x58   :  { %1458 = vmatpush3.bf16.msra.mxu0 %v1803_v17  ;;  %v370_v61 = vpack.c.bf16 %v180_v49, %v173_v60  ;;  %v2170_v7 = vpack.c.bf16 %v494_v6, %v493_v5  ;;  %v2174_v10 = vpack.c.bf16 %v496_v9, %v495_v8  ;;  %v2178_v13 = vpack.c.bf16 %v498_v12, %v497_v11  ;;  %v500_v17 = vld [vmem:[#allocation8 + $0x78] sm:$0xff]  ;;  %v1815_v60 = vld [vmem:[#allocation7 + $0x48] sm:$0xff]   ;;  %v1820_v3 = vld [vmem:[#allocation7 + $0x70] sm:$0xff]  }
  0x59   :  { %1463 = vmatprep.subr.bf16.mxu0 %v1805_v37  ;;  %1446 = vmatpush3.bf16.msra.mxu1 %v1810_v42  ;;  %v1972_v18 = vmov 0.0   ;;  %v1821_v5 = vld [vmem:[#allocation7 + $0x78] sm:$0xff]   ;;  %v1822_v6 = vld [vmem:[#allocation7] sm:$0xff]   ;;  %vm1320_vm12 = vmpackc.low %vm2118_vm6, %vm1973_vm8 }
  0x5a   :  { %1675 = vmatprep.subr.bf16.mxu1 %v1970_v57 }
  0x5b   :  { %1460 = vmatmul.mubr.msk.bf16.vlgmr.msra.gmra.mrb[0].mxu0 %vm234_vm0, %v182_v47 }
  0x5c   :  { %1464 = vmatpush3.bf16.msra.mxu0 %v1805_v37  ;;  %1471 = vmatprep.mubr.msk.bf16.mxu0 %vm234_vm0, %v369_v52 }
  0x5d   :  { %1465 = vmatprep.subr.bf16.mxu0 %v1807_v48  ;;  %1448 = vmatmul.mubr.msk.bf16.vlgmr.msra.gmra.mrb[0].mxu1 %vm234_vm0, %v2102_v14  ;;  %v499_v14 = vld [vmem:[#allocation8 + $0x70] sm:$0xff] }
  0x5e   :  { %1677 = vmatpush3.bf16.msra.mxu1 %v2147_v56  ;;  %1507 = vmatprep.mubr.msk.f32.mxu1 %vm1971_vm7, %v1972_v18  ;;  %v2183_v19 = vpack.c.bf16 %v500_v17, %v499_v14 }
  0x5f   :  { %1678 = vmatprep.subr.bf16.mxu1 %v1970_v57 }
  0x60   :  { %1466 = vmatpush3.bf16.msra.mxu0 %v1807_v48 }
  0x61   :  { %1467 = vmatprep.subr.bf16.mxu0 %v1809_v53 }
  0x62   :  { %1680 = vmatpush3.bf16.msra.mxu1 %v2154_v59 }
  0x63   :  { %1681 = vmatprep.subr.bf16.mxu1 %v1970_v57 }
  0x64   :  { %1468 = vmatpush3.bf16.msra.mxu0 %v1809_v53 }
  0x65   :  { %1469 = vmatprep.subr.bf16.mxu0 %v1812_v58 }
  0x66   :  { %1683 = vmatpush3.bf16.msra.mxu1 %v2162_v0 }
  0x67   :  { %1684 = vmatprep.subr.bf16.mxu1 %v1970_v57 }
  0x68   :  { %1470 = vmatpush3.bf16.msra.mxu0 %v1812_v58  ;;  %v1814_v58 = vld [vmem:[#allocation7 + $0x40] sm:$0xff]  }
  0x69   :  { %1545 = vmatprep.subr.bf16.mxu0 %v1814_v58 }
  0x6a   :  { %1686 = vmatpush3.bf16.msra.mxu1 %v2166_v4 }
  0x6b   :  { %1472 = vmatmul.mubr.msk.bf16.vlgmr.msra.gmra.mrb[0].mxu0 %vm234_vm0, %v370_v61  ;;  %1687 = vmatprep.subr.bf16.mxu1 %v1970_v57  ;;  %v1816_v61 = vld [vmem:[#allocation7 + $0x50] sm:$0xff]  }
  0x6c   :  { %1546 = vmatpush3.bf16.msra.mxu0 %v1814_v58 }
  0x6d   :  { %1547 = vmatprep.subr.bf16.mxu0 %v1815_v60 }
  0x6e   :  { %1689 = vmatpush3.bf16.msra.mxu1 %v2170_v7 }
  0x6f   :  { %1690 = vmatprep.subr.bf16.mxu1 %v1970_v57 }
  0x70   :  { %1548 = vmatpush3.bf16.msra.mxu0 %v1815_v60 }
  0x71   :  { %1549 = vmatprep.subr.bf16.mxu0 %v1816_v61 }
  0x72   :  { %1692 = vmatpush3.bf16.msra.mxu1 %v2174_v10 }
  0x73   :  { %1693 = vmatprep.subr.bf16.mxu1 %v1970_v57 }
  0x74   :  { %1550 = vmatpush3.bf16.msra.mxu0 %v1816_v61 }
  0x75   :  { %1551 = vmatprep.subr.bf16.mxu0 %v1817_v62 }
  0x76   :  { %1695 = vmatpush3.bf16.msra.mxu1 %v2178_v13 }
  0x77   :  { %1696 = vmatprep.subr.bf16.mxu1 %v1970_v57 }
  0x78   :  { %1552 = vmatpush3.bf16.msra.mxu0 %v1817_v62 }
  0x79   :  { %1553 = vmatprep.subr.bf16.mxu0 %v1818_v63 }
  0x7a   :  { %1698 = vmatpush3.bf16.msra.mxu1 %v2183_v19 }
  0x7b   :  { %1699 = vmatprep.subr.bf16.mxu1 %v1970_v57 }
  0x7c   :  { %1554 = vmatpush3.bf16.msra.mxu0 %v1818_v63 }
  0x7d   :  { %1555 = vmatprep.subr.bf16.mxu0 %v1819_v2 }
  0x80   :  { %1556 = vmatpush3.bf16.msra.mxu0 %v1819_v2 }
  0x81   :  { %1557 = vmatprep.subr.bf16.mxu0 %v1820_v3 }
  0x84   :  { %1558 = vmatpush3.bf16.msra.mxu0 %v1820_v3 }
  0x85   :  { %1559 = vmatprep.subr.bf16.mxu0 %v1821_v5 }
  0x88   :  { %1560 = vmatpush3.bf16.msra.mxu0 %v1821_v5  ;;  %v1824_v5 = vld [vmem:[#allocation7 + $0x10] sm:$0xff]  }
  0x89   :  { %1565 = vmatprep.subr.bf16.mxu0 %v1822_v6 }
 0x130   :  { %v1449_v20 = vpop.f32.mrb[0].mxu1 }
 0x131   :  { %v275_v21 = vpop.f32.mrb[1].mxu1 }
 0x132   :  { %v1450_v22 = vpop.f32.mrb[2].mxu1 }
 0x133   :  { %v278_v24 = vpop.f32.mrb[3].mxu1 }
 0x13e   :  { %v1473_v25 = vpop.f32.mrb[0].mxu0 }
 0x13f   :  { %v2188_v26 = vadd.f32 %v1473_v25, %v1449_v20  ;;  %v444_v28 = vpop.f32.mrb[1].mxu0 }
 0x140   :  { %v2190_v29 = vadd.f32 %v444_v28, %v275_v21  ;;  %v1474_v30 = vpop.f32.mrb[2].mxu0  ;;  %v643_v21 = vld [vmem:[%s2331_s4] sm:$0x1] }
 0x141   :  { %v2192_v31 = vadd.f32 %v1474_v30, %v1450_v22  ;;  %v447_v32 = vpop.f32.mrb[3].mxu0  ;;  %v474_v46 = vmul.f32 %v2188_v26, %v2188_v26  ;;  %v2248_v22 = vsub.s32 0, %v2094_v1  ;;  %v647_v28 = vld [vmem:[%s2332_s5] sm:$0x1]  ;;  %v1830_v1 = vld [vmem:[#allocation7 + $0x80] sm:$0xff]  }
 0x142   :  { %v2194_v33 = vadd.f32 %v447_v32, %v278_v24  ;;  %v472_v42 = vmul.f32 %v2190_v29, %v2190_v29 }
 0x143   :  { %v475_v48 = vmul.f32 %v2192_v31, %v2192_v31 }
 0x144   :  { %v463_v34 = vadd.f32 %v2194_v33, %v2190_v29  ;;  %v473_v40 = vmul.f32 %v2194_v33, %v2194_v33 }
 0x146   :  { %v464_v35 = vadd.f32 %v2188_v26, %v463_v34  ;;  %v476_v44 = vadd.f32 %v473_v40, %v472_v42 }
 0x148   :  { %v465_v36 = vadd.f32 %v2192_v31, %v464_v35  ;;  %v477_v47 = vadd.f32 %v476_v44, %v474_v46 }
 0x14a   :  { %v466_v37 = vrot.slane %v465_v36, 4  ;;  %v478_v49 = vadd.f32 %v477_v47, %v475_v48 }
 0x14c   :  { %v467_v38 = vadd.f32 %v466_v37, %v465_v36  ;;  %v479_v50 = vrot.slane %v478_v49, 4 }
 0x14e   :  { %v468_v39 = vrot.slane %v467_v38, 2  ;;  %v480_v51 = vadd.f32 %v479_v50, %v478_v49 }
 0x150   :  { %v469_v41 = vadd.f32 %v468_v39, %v467_v38  ;;  %v481_v52 = vrot.slane %v480_v51, 2 }
 0x152   :  { %v470_v43 = vrot.slane %v469_v41, 1  ;;  %v482_v53 = vadd.f32 %v481_v52, %v480_v51 }
 0x154   :  { %v471_v45 = vadd.f32 %v470_v43, %v469_v41  ;;  %v483_v54 = vrot.slane %v482_v53, 1 }
 0x156   :  { %1508 = vmatmul.mubr.f32.vlgmr.msra.gmra.mrb[4].mxu1 %v471_v45  ;;  %v484_v55 = vadd.f32 %v483_v54, %v482_v53  ;;  %v1823_v53 = vld [vmem:[#allocation7 + $0x8] sm:$0xff]  }
 0x157   :  { %1701 = vmatpush3.bf16.msra.mxu1 %v2147_v56  ;;  %1542 = vmatprep.mubr.msk.f32.mxu1 %vm1971_vm7, %v1972_v18 }
 0x158   :  { %1702 = vmatprep.subr.bf16.mxu1 %v1970_v57 }
 0x15b   :  { %1704 = vmatpush3.bf16.msra.mxu1 %v2154_v59 }
 0x15c   :  { %1705 = vmatprep.subr.bf16.mxu1 %v1970_v57 }
 0x15f   :  { %1707 = vmatpush3.bf16.msra.mxu1 %v2162_v0 }
 0x160   :  { %1708 = vmatprep.subr.bf16.mxu1 %v1970_v57 }
 0x163   :  { %1710 = vmatpush3.bf16.msra.mxu1 %v2166_v4 }
 0x164   :  { %1711 = vmatprep.subr.bf16.mxu1 %v1970_v57 }
 0x167   :  { %1713 = vmatpush3.bf16.msra.mxu1 %v2170_v7 }
 0x168   :  { %1714 = vmatprep.subr.bf16.mxu1 %v1970_v57 }
 0x16b   :  { %1716 = vmatpush3.bf16.msra.mxu1 %v2174_v10 }
 0x16c   :  { %1717 = vmatprep.subr.bf16.mxu1 %v1970_v57 }
 0x16f   :  { %1719 = vmatpush3.bf16.msra.mxu1 %v2178_v13 }
 0x170   :  { %1720 = vmatprep.subr.bf16.mxu1 %v1970_v57 }
 0x173   :  { %1722 = vmatpush3.bf16.msra.mxu1 %v2183_v19 }
 0x174   :  { %1723 = vmatprep.subr.bf16.mxu1 %v1970_v57 }
 0x176   :  { %1543 = vmatmul.mubr.f32.vlgmr.msra.gmra.mrb[6].mxu1 %v484_v55 }
 0x177   :  { %1725 = vmatpush3.bf16.msra.mxu1 %v2147_v56  ;;  %1637 = vmatprep.mubr.msk.f32.mxu1 %vm1971_vm7, %v1972_v18 }
 0x178   :  { %1726 = vmatprep.subr.bf16.mxu1 %v1970_v57 }
 0x17b   :  { %1728 = vmatpush3.bf16.msra.mxu1 %v2154_v59 }
 0x17c   :  { %1729 = vmatprep.subr.bf16.mxu1 %v1970_v57 }
 0x17f   :  { %1731 = vmatpush3.bf16.msra.mxu1 %v2162_v0 }
 0x180   :  { %1732 = vmatprep.subr.bf16.mxu1 %v1970_v57 }
 0x183   :  { %1734 = vmatpush3.bf16.msra.mxu1 %v2166_v4 }
 0x184   :  { %1735 = vmatprep.subr.bf16.mxu1 %v1970_v57 }
 0x187   :  { %1737 = vmatpush3.bf16.msra.mxu1 %v2170_v7 }
 0x188   :  { %1738 = vmatprep.subr.bf16.mxu1 %v1970_v57 }
 0x18b   :  { %1740 = vmatpush3.bf16.msra.mxu1 %v2174_v10 }
 0x18c   :  { %1741 = vmatprep.subr.bf16.mxu1 %v1970_v57 }
 0x18f   :  { %1743 = vmatpush3.bf16.msra.mxu1 %v2178_v13 }
 0x190   :  { %1744 = vmatprep.subr.bf16.mxu1 %v1970_v57 }
 0x193   :  { %1746 = vmatpush3.bf16.msra.mxu1 %v2183_v19 }
 0x194   :  { %1747 = vmatprep.subr.bf16.mxu1 %v1970_v57 }
 0x229   :  { %v567_v8 = vpop.f32.mrb[4].mxu1 }
 0x22a   :  { %v1509_v9 = vpop.f32.mrb[5].mxu1  ;;  %v641_v11 = vmul.f32 %v567_v8, %v567_v8 }
 0x249   :  { %v637_v12 = vpop.f32.mrb[6].mxu1 }
 0x24a   :  { %v642_v14 = vsub.f32 %v637_v12, %v641_v11  ;;  %v1544_v17 = vpop.f32.mrb[7].mxu1  ;;  %v1826_v12 = vld [vmem:[#allocation7 + $0x20] sm:$0xff]  }
 0x24b   :  { %v1828_v17 = vld [vmem:[#allocation7 + $0x30] sm:$0xff]  }
 0x24c   :  { %v644_v20 = vadd.f32 1e-05, %v642_v14  ;;  %v1827_v14 = vld [vmem:[#allocation7 + $0x28] sm:$0xff]  }
 0x24e   :  { %1840 = vrsqrt.f32 %v644_v20  ;;  %v1829_v20 = vld [vmem:[#allocation7 + $0x38] sm:$0xff]  }
 0x258   :  { %v1841_v24 = vpop.eup %1840 }
 0x259   :  { %v646_v25 = vmul.f32 %v1841_v24, %v643_v21  ;;  %v1831_v21 = vld [vmem:[#allocation7 + $0x88] sm:$0xff]   ;;  %v1832_v24 = vld [vmem:[#allocation7 + $0x90] sm:$0xff]  }
 0x25b   :  { %v648_v30 = vmul.f32 %v646_v25, %v567_v8  ;;  %v654_v32 = vrot.slane %v646_v25, %v2248_v22  ;;  %v1833_v25 = vld [vmem:[#allocation7 + $0x98] sm:$0xff]  }
 0x25d   :  { %v649_v34 = vsub.f32 %v647_v28, %v648_v30  ;;  %v656_v35 = vmul.f32 %v2190_v29, %v654_v32  ;;  %v657_v36 = vmul.f32 %v2194_v33, %v654_v32  ;;  %v658_v38 = vmul.f32 %v2188_v26, %v654_v32  ;;  %v1834_v28 = vld [vmem:[#allocation7 + $0xa0] sm:$0xff]   ;;  %v1836_v30 = vld [vmem:[#allocation7 + $0xb0] sm:$0xff]  }
 0x25e   :  { %v659_v39 = vmul.f32 %v2192_v31, %v654_v32 }
 0x25f   :  { %v664_v37 = vrot.slane %v649_v34, %v2248_v22 }
 0x261   :  { %v666_v40 = vadd.f32 %v664_v37, %v656_v35  ;;  %v667_v41 = vadd.f32 %v664_v37, %v657_v36  ;;  %v668_v42 = vadd.f32 %v664_v37, %v658_v38  ;;  %v669_v43 = vadd.f32 %v664_v37, %v659_v39 }
 0x263   :  { %v670_v44 = vmax.f32 %v666_v40, 0.0  ;;  %v671_v45 = vmax.f32 %v667_v41, 0.0  ;;  %v672_v46 = vmax.f32 %v668_v42, 0.0  ;;  %v673_v47 = vmax.f32 %v669_v43, 0.0 }
 0x265   :  { %v716_v48 = vpack.c.bf16 %v671_v45, %v670_v44  ;;  %v676_v49 = vrot.slane %v672_v46, 7  ;;  %v689_v50 = vrot.slane %v673_v47, 1  ;;  %v717_v29 = vpack.c.bf16 %v673_v47, %v672_v46 }
 0x266   :  { %v674_v51 = vrot.slane %v670_v44, 7  ;;  %v675_v33 = vrot.slane %v671_v45, 7  ;;  %v677_v52 = vrot.slane %v673_v47, 7  ;;  %v686_v54 = vrot.slane %v670_v44, 1 }
 0x267   :  { %1561 = vmatprep.mubr.bf16.mxu0 %v716_v48  ;;  %v687_v26 = vrot.slane %v671_v45, 1  ;;  %v688_v31 = vrot.slane %v672_v46, 1 }
 0x268   :  { %1562 = vmatmul.mubr.bf16.vlgmr.msra.gmra.mrb[4].mxu0 %v717_v29  ;;  %v680_v55 = vsel %vm155_vm1, %v674_v51, %v675_v33  ;;  %v681_v58 = vsel %vm155_vm1, %v677_v52, %v674_v51  ;;  %v678_v60 = vsel %vm155_vm1, %v676_v49, %v677_v52  ;;  %v679_v61 = vsel %vm155_vm1, %v675_v33, %v676_v49 }
 0x269   :  { %1566 = vmatpush3.bf16.msra.mxu0 %v1822_v6  ;;  %v1304_v62 = vpack.c.bf16 %v680_v55, %v681_v58  ;;  %v1307_v63 = vpack.c.bf16 %v678_v60, %v679_v61  ;;  %v691_v2 = vsel %vm172_vm2, %v687_v26, %v688_v31  ;;  %v692_v3 = vsel %vm172_vm2, %v686_v54, %v687_v26  ;;  %v1825_v6 = vld [vmem:[#allocation7 + $0x18] sm:$0xff]  }
 0x26a   :  { %1567 = vmatprep.subr.bf16.mxu0 %v1823_v53  ;;  %v1318_v15 = vpack.c.bf16 %v691_v2, %v692_v3  ;;  %v690_v8 = vsel %vm172_vm2, %v688_v31, %v689_v50  ;;  %v693_v9 = vsel %vm172_vm2, %v689_v50, %v686_v54 }
 0x26b   :  { %1581 = vmatprep.mubr.msk.bf16.mxu0 %vm1303_vm9, %v1304_v62  ;;  %v1321_v11 = vpack.c.bf16 %v693_v9, %v690_v8 }
 0x26d   :  { %1568 = vmatpush3.bf16.msra.mxu0 %v1823_v53 }
 0x26e   :  { %1569 = vmatprep.subr.bf16.mxu0 %v1824_v5 }
 0x271   :  { %1570 = vmatpush3.bf16.msra.mxu0 %v1824_v5 }
 0x272   :  { %1571 = vmatprep.subr.bf16.mxu0 %v1825_v6 }
 0x275   :  { %1572 = vmatpush3.bf16.msra.mxu0 %v1825_v6 }
 0x276   :  { %1573 = vmatprep.subr.bf16.mxu0 %v1826_v12 }
 0x279   :  { %1574 = vmatpush3.bf16.msra.mxu0 %v1826_v12 }
 0x27a   :  { %1575 = vmatprep.subr.bf16.mxu0 %v1827_v14 }
 0x27d   :  { %1576 = vmatpush3.bf16.msra.mxu0 %v1827_v14 }
 0x27e   :  { %1577 = vmatprep.subr.bf16.mxu0 %v1828_v17 }
 0x281   :  { %1578 = vmatpush3.bf16.msra.mxu0 %v1828_v17 }
 0x282   :  { %1579 = vmatprep.subr.bf16.mxu0 %v1829_v20 }
 0x285   :  { %1580 = vmatpush3.bf16.msra.mxu0 %v1829_v20 }
 0x286   :  { %1585 = vmatprep.subr.bf16.mxu0 %v1830_v1 }
 0x288   :  { %1582 = vmatmul.mubr.msk.bf16.vlgmr.msra.gmra.mrb[4].mxu0 %vm1306_vm10, %v1307_v63 }
 0x289   :  { %1586 = vmatpush3.bf16.msra.mxu0 %v1830_v1  ;;  %1601 = vmatprep.mubr.msk.bf16.mxu0 %vm1317_vm11, %v1318_v15 }
 0x28a   :  { %1587 = vmatprep.subr.bf16.mxu0 %v1831_v21 }
 0x28d   :  { %1588 = vmatpush3.bf16.msra.mxu0 %v1831_v21 }
 0x28e   :  { %1589 = vmatprep.subr.bf16.mxu0 %v1832_v24 }
 0x291   :  { %1590 = vmatpush3.bf16.msra.mxu0 %v1832_v24 }
 0x292   :  { %1591 = vmatprep.subr.bf16.mxu0 %v1833_v25 }
 0x295   :  { %1592 = vmatpush3.bf16.msra.mxu0 %v1833_v25 }
 0x296   :  { %1593 = vmatprep.subr.bf16.mxu0 %v1834_v28 }
 0x299   :  { %1594 = vmatpush3.bf16.msra.mxu0 %v1834_v28 }
 0x29a   :  { %1595 = vmatprep.subr.bf16.mxu0 %v1835_v16 }
 0x29d   :  { %1596 = vmatpush3.bf16.msra.mxu0 %v1835_v16 }
 0x29e   :  { %1597 = vmatprep.subr.bf16.mxu0 %v1836_v30 }
 0x2a1   :  { %1598 = vmatpush3.bf16.msra.mxu0 %v1836_v30 }
 0x2a2   :  { %1599 = vmatprep.subr.bf16.mxu0 %v1837_v23 }
 0x2a5   :  { %1600 = vmatpush3.bf16.msra.mxu0 %v1837_v23 }
 0x2a8   :  { %1602 = vmatmul.mubr.msk.bf16.vlgmr.msra.gmra.mrb[4].mxu0 %vm1320_vm12, %v1321_v11 }
 0x37b   :  { %v1603_v32 = vpop.f32.mrb[4].mxu0 }
 0x37c   :  { %v1030_v34 = vpop.f32.mrb[5].mxu0  ;;  %v1060_v40 = vmul.f32 %v1603_v32, %v1603_v32 }
 0x37d   :  { %v1604_v35 = vpop.f32.mrb[6].mxu0  ;;  %v1058_v37 = vmul.f32 %v1030_v34, %v1030_v34 }
 0x37e   :  { %v1033_v36 = vpop.f32.mrb[7].mxu0  ;;  %v1061_v43 = vmul.f32 %v1604_v35, %v1604_v35 }
 0x37f   :  { %v1049_v38 = vadd.f32 %v1033_v36, %v1030_v34  ;;  %v1059_v39 = vmul.f32 %v1033_v36, %v1033_v36 }
 0x381   :  { %v1050_v41 = vadd.f32 %v1603_v32, %v1049_v38  ;;  %v1062_v42 = vadd.f32 %v1059_v39, %v1058_v37 }
 0x383   :  { %v1051_v44 = vadd.f32 %v1604_v35, %v1050_v41  ;;  %v1063_v45 = vadd.f32 %v1062_v42, %v1060_v40 }
 0x385   :  { %v1052_v46 = vrot.slane %v1051_v44, 4  ;;  %v1064_v47 = vadd.f32 %v1063_v45, %v1061_v43 }
 0x387   :  { %v1053_v48 = vadd.f32 %v1052_v46, %v1051_v44  ;;  %v1065_v51 = vrot.slane %v1064_v47, 4 }
 0x389   :  { %v1054_v49 = vrot.slane %v1053_v48, 2  ;;  %v1066_v33 = vadd.f32 %v1065_v51, %v1064_v47 }
 0x38b   :  { %v1055_v27 = vadd.f32 %v1054_v49, %v1053_v48 }
 0x38d   :  { %v1056_v50 = vrot.slane %v1055_v27, 1 }
 0x38f   :  { %v1057_v29 = vadd.f32 %v1056_v50, %v1055_v27 }
 0x391   :  { %1638 = vmatmul.mubr.f32.vlgmr.msra.gmra.mrb[8].mxu1 %v1057_v29 }
 0x392   :  { %1749 = vmatpush3.bf16.msra.mxu1 %v2147_v56  ;;  %1672 = vmatprep.mubr.msk.f32.mxu1 %vm1971_vm7, %v1972_v18  ;;  %v1067_v56 = vrot.slane %v1066_v33, 2 }
 0x393   :  { %1750 = vmatprep.subr.bf16.mxu1 %v1970_v57 }
 0x396   :  { %1752 = vmatpush3.bf16.msra.mxu1 %v2154_v59  ;;  %v1068_v59 = vadd.f32 %v1067_v56, %v1066_v33 }
 0x397   :  { %1753 = vmatprep.subr.bf16.mxu1 %v1970_v57 }
 0x39a   :  { %1755 = vmatpush3.bf16.msra.mxu1 %v2162_v0  ;;  %v1069_v0 = vrot.slane %v1068_v59, 1 }
 0x39b   :  { %1756 = vmatprep.subr.bf16.mxu1 %v1970_v57 }
 0x39e   :  { %1758 = vmatpush3.bf16.msra.mxu1 %v2166_v4  ;;  %v1070_v4 = vadd.f32 %v1069_v0, %v1068_v59 }
 0x39f   :  { %1759 = vmatprep.subr.bf16.mxu1 %v1970_v57 }
 0x3a2   :  { %1761 = vmatpush3.bf16.msra.mxu1 %v2170_v7 }
 0x3a3   :  { %1762 = vmatprep.subr.bf16.mxu1 %v1970_v57 }
 0x3a6   :  { %1764 = vmatpush3.bf16.msra.mxu1 %v2174_v10  ;;  %v1213_v10 = vld [vmem:[%s2333_s6] sm:$0x1]  ;;  %s1932_s6 = scalar_lea.vmem %s1254_s16, 512 }
 0x3a7   :  { %1765 = vmatprep.subr.bf16.mxu1 %v1970_v57  ;;  %p1933_p4 = scmp.ne.s32.totalorder %s1254_s16, %s1932_s6  ;;  %p1938_p6 = scmp.lt.s32.totalorder %s1932_s6, %s1932_s6 }
 0x3a9   :  { %p1939_p7 = por %p1938_p6, %p1937_p5 }
 0x3aa   :  { %1767 = vmatpush3.bf16.msra.mxu1 %v2178_v13 }
 0x3ab   :  { %1768 = vmatprep.subr.bf16.mxu1 %v1970_v57  ;;  %v1217_v57 = vld [vmem:[%s2334_s7] sm:$0x1]  ;;  %p1940_p8 = pnand %p1939_p7, %p1933_p4 }
 0x3ae   :  { %1770 = vmatpush3.bf16.msra.mxu1 %v2183_v19 }
 0x3b1   :  { %1673 = vmatmul.mubr.f32.vlgmr.msra.gmra.mrb[10].mxu1 %v1070_v4 }
 0x464   :  { %v1137_v18 = vpop.f32.mrb[8].mxu1 }
 0x465   :  { %v1639_v52 = vpop.f32.mrb[9].mxu1  ;;  %v1211_v7 = vmul.f32 %v1137_v18, %v1137_v18 }
 0x484   :  { %v1207_v53 = vpop.f32.mrb[10].mxu1 }
 0x485   :  { %v1212_v54 = vsub.f32 %v1207_v53, %v1211_v7  ;;  %v1674_v26 = vpop.f32.mrb[11].mxu1 }
 0x487   :  { %v1214_v31 = vadd.f32 1e-05, %v1212_v54 }
 0x489   :  { %1842 = vrsqrt.f32 %v1214_v31 }
 0x493   :  { %v1843_v13 = vpop.eup %1842 }
 0x494   :  { %v1216_v55 = vmul.f32 %v1843_v13, %v1213_v10 }
 0x496   :  { %v1218_v19 = vmul.f32 %v1216_v55, %v1137_v18  ;;  %v1224_v58 = vrot.slane %v1216_v55, %v2248_v22 }
 0x498   :  { %v1219_v60 = vsub.f32 %v1217_v57, %v1218_v19  ;;  %v1226_v61 = vmul.f32 %v1224_v58, %v1030_v34  ;;  %v1227_v62 = vmul.f32 %v1224_v58, %v1033_v36  ;;  %v1228_v63 = vmul.f32 %v1603_v32, %v1224_v58 }
 0x499   :  { %v1229_v2 = vmul.f32 %v1604_v35, %v1224_v58 }
 0x49a   :  { %v1234_v3 = vrot.slane %v1219_v60, %v2248_v22 }
 0x49c   :  { %v1236_v5 = vadd.f32 %v1234_v3, %v1226_v61  ;;  %v1237_v15 = vadd.f32 %v1234_v3, %v1227_v62  ;;  %v1238_v8 = vadd.f32 %v1234_v3, %v1228_v63  ;;  %v1239_v9 = vadd.f32 %v1234_v3, %v1229_v2 }
 0x49e   :  { %v1240_v11 = vmax.f32 %v1236_v5, 0.0  ;;  %v1241_v6 = vmax.f32 %v1237_v15, 0.0  ;;  %v1242_v12 = vmax.f32 %v1238_v8, 0.0  ;;  %v1243_v14 = vmax.f32 %v1239_v9, 0.0 }
 0x4a0   :  { %1244 = vst [vmem:[#allocation10] sm:$0xff] %v1240_v11  ;;  %1245 = vst [vmem:[#allocation10 + $0x8] sm:$0xff] %v1241_v6 }
 0x4a1   :  { %1246 = vst [vmem:[#allocation10 + $0x10] sm:$0xff] %v1242_v12  ;;  %1247 = vst [vmem:[#allocation10 + $0x18] sm:$0xff] %v1243_v14 }
 0x4a2   :  { %1943 = shalt.err (!%p1940_p8)
}
 0x4a3   :  { %s1944_s20 = scalar_lea.hbm %s2335_s8, 512 }
 0x4a4   :  { %p1945_p9 = scmp.ne.s32.totalorder %s2335_s8, %s1944_s20  ;;  %p1948_p10 = scmp.lt.u32.totalorder %s1944_s20, %s2335_s8 }
 0x4a6   :  { %p1950_p11 = pnand %p1948_p10, %p1945_p9 }
 0x4a8   :  { %1953 = shalt.err (!%p1950_p11)
}
 0x4a9   :  { %1259 = dma.vmem_to_hbm [thread:$0]  %s1254_s16, 512, %s2335_s8, [#allocation4], %s1968_s2, %s1968_s2, %s1969_s17  }
 0x4aa   :  { %1960 = dma.done.wait [#allocation4], 512  }
 0x4ab   :  { %1961 = vsyncadd [#allocation4], 4294966784 }
 0x4ac   :  { %1263 = vsyncpa [#allocation3], 1 }
 0x4ad   :  { %1264 = vsyncpa [#allocation6], 1 }
 0x4ae   :  { %1265 = vsyncpa [#allocation9], 1 }
 0x4af   :  { %1266 = vsyncpa [#allocation4], 1 }

</bundles_post_ra>
